<compile_context>
chip_gen: v6e
topology: v6e:2x2x1
jax: 0.10.0
libtpu: 0.0.40
codegen_flags: <defaults>
</compile_context>

<pallas_src>
import functools

import numpy as np
import jax
import jax.numpy as jnp
from jax.experimental import pallas as pl
from jax.experimental.pallas import tpu as pltpu

_LANE = 128
_SUBLANE = 8
_GELU_C = 0.7978845608028654  # sqrt(2/pi)


def _round_up(v, m):
    return ((v + m - 1) // m) * m


def _gelu_tanh(x):
    # tanh-approximate GELU: |err| vs exact erf-GELU < 3e-3 (well inside the
    # validation tolerance).  tanh runs on the EUP slot, leaving the VALU free.
    return 0.5 * x * (1.0 + jnp.tanh(_GELU_C * (x + 0.044715 * x * x * x)))


def _dense_gcn_kernel(num_layers, f_max, adj_ref, x_ref, w_ref, b_ref, out_ref):
    """One grid step == one graph of the batch.

    adj_ref: [1, Np, Np]      bf16   (streamed per graph)
    x_ref:   [1, Np, F_max]   f32    (streamed per graph, zero-padded features)
    w_ref:   [L, F_max, F_max] bf16  (W_i^T zero-padded, resident)
    b_ref:   [L, 1, F_max]    f32    (biases zero-padded, resident)
    out_ref: [1, Np, L*F_max] f32    (layer i occupies lanes [i*F_max, (i+1)*F_max))
    """
    adj_bf = adj_ref[0]                                            # [Np, Np] bf16 MXU operand
    deg = jnp.sum(adj_bf.astype(jnp.float32), axis=-1, keepdims=True)
    deg = jnp.maximum(deg, 1.0)                                    # clamp(min=1), add_loop=False
    dinv = jax.lax.rsqrt(deg)                                      # D^{-1/2}, EUP rsqrt, [Np, 1]

    h = x_ref[0]                                                   # [Np, F_max] f32
    for i in range(num_layers):
        # Dense Linear: h @ W_i^T   (bf16 operands, f32 accumulation on the MXU)
        hw = jnp.dot(h.astype(jnp.bfloat16), w_ref[i],
                     preferred_element_type=jnp.float32)           # [Np, F_max]
        # (D^-1/2 A D^-1/2) hw == D^-1/2 (A (D^-1/2 hw))  -> never materializes A_hat
        hw = (dinv * hw).astype(jnp.bfloat16)
        ah = jnp.dot(adj_bf, hw, preferred_element_type=jnp.float32)
        h = dinv * ah + b_ref[i]                                   # [1, F_max] bias broadcast
        h = _gelu_tanh(h)                                          # gelu_layers_index = all layers
        # Dropout(0.1) / edge dropout are identity in eval mode (deterministic inference).
        # 128-lane-aligned, full-width (unmasked) store into the packed output slab.
        out_ref[0, :, i * f_max:(i + 1) * f_max] = h.astype(out_ref.dtype)


def dense_gcn_forward_batched(x, adj, weights, biases):
    """Batched forward: x [B,N,F0], adj [B,N,N] -> list of per-layer [B,N,F_i]."""
    b_sz, n, f_in = x.shape
    num_layers = len(weights)
    dims = [int(f_in)] + [int(w.shape[0]) for w in weights]
    f_max = _round_up(max(dims), _LANE)
    n_pad = _round_up(n, _SUBLANE)
    out_w = num_layers * f_max

    # --- glue / layout plumbing: zero-pad to lane/sublane friendly shapes ---
    x_p = jnp.zeros((b_sz, n_pad, f_max), jnp.float32)
    x_p = x_p.at[:, :n, :f_in].set(x.astype(jnp.float32))
    adj_p = jnp.zeros((b_sz, n_pad, n_pad), jnp.bfloat16)          # bf16 adj: half the HBM/VMEM
    adj_p = adj_p.at[:, :n, :n].set(adj.astype(jnp.bfloat16))
    w_pack = jnp.zeros((num_layers, f_max, f_max), jnp.bfloat16)   # one coalesced weight slab
    b_pack = jnp.zeros((num_layers, 1, f_max), jnp.float32)        # one coalesced bias slab
    for i, (w, b) in enumerate(zip(weights, biases)):
        f_o, f_i = w.shape
        w_pack = w_pack.at[i, :f_i, :f_o].set(jnp.transpose(w).astype(jnp.bfloat16))
        b_pack = b_pack.at[i, 0, :f_o].set(b.astype(jnp.float32))

    # Advisory cost estimate so XLA can schedule/overlap the custom call.
    flops = trans = 0
    for i in range(num_layers):
        flops += 2 * n * dims[i] * dims[i + 1] + 2 * n * n * dims[i + 1]
        trans += n * dims[i + 1]
    cost = pl.CostEstimate(
        flops=b_sz * flops,
        transcendentals=b_sz * (trans + n),
        bytes_accessed=(adj_p.size * 2 + x_p.size * 4 + w_pack.size * 2
                        + b_pack.size * 4 + b_sz * n_pad * out_w * 4),
    )

    kernel = functools.partial(_dense_gcn_kernel, num_layers, f_max)
    out = pl.pallas_call(
        kernel,
        out_shape=jax.ShapeDtypeStruct((b_sz, n_pad, out_w), jnp.float32),
        grid=(b_sz,),
        in_specs=[
            pl.BlockSpec((1, n_pad, n_pad), lambda g: (g, 0, 0)),            # adj: streamed
            pl.BlockSpec((1, n_pad, f_max), lambda g: (g, 0, 0)),            # x:   streamed
            pl.BlockSpec((num_layers, f_max, f_max), lambda g: (0, 0, 0)),   # W:   resident
            pl.BlockSpec((num_layers, 1, f_max), lambda g: (0, 0, 0)),       # b:   resident
        ],
        out_specs=pl.BlockSpec((1, n_pad, out_w), lambda g: (g, 0, 0)),
        compiler_params=pltpu.CompilerParams(
            dimension_semantics=("parallel",),        # graphs independent -> megacore on v7x
            vmem_limit_bytes=32 * 1024 * 1024,        # explicit VMEM budget (v7x-safe)
        ),
        cost_estimate=cost,
    )(adj_p, x_p, w_pack, b_pack)

    # Slice the packed slab back into per-layer embeddings (and drop node padding).
    return [out[:, :n, i * f_max: i * f_max + dims[i + 1]] for i in range(num_layers)]


def dense_gcn_forward(x, adj, weights, biases):
    """Single-graph forward matching DenseGCNModel.forward (eval mode)."""
    embs = dense_gcn_forward_batched(x[None], adj[None], weights, biases)
    return [e[0] for e in embs]


def reference_forward(x, adj, weights, biases):
    """Pure-JAX reference of DenseGCNModel.forward (eval mode, exact erf GELU)."""
    deg = jnp.maximum(jnp.sum(adj, axis=-1), 1.0)
    dinv = deg ** -0.5
    adj_n = dinv[:, None] * adj * dinv[None, :]
    h = x
    embs = []
    hp = jax.lax.Precision.HIGHEST
    for w, b in zip(weights, biases):
        h = jnp.dot(h, w.T, precision=hp)
        h = jnp.dot(adj_n, h, precision=hp) + b
        h = jax.nn.gelu(h, approximate=False)
        embs.append(h)
    return embs


if __name__ == "__main__":
    key = jax.random.PRNGKey(0)

    # Small deterministic problem consistent with the module:
    # B independent drug-target graphs, each with num_drug + num_target nodes.
    batch = 4
    num_drug, num_target = 16, 16
    n_nodes = num_drug + num_target                      # N = 32
    layers_dim = [16, 32, 64, 32]                        # 3 DenseGCNConv layers
    num_layers = len(layers_dim) - 1

    k_x, k_adj, *k_w = jax.random.split(key, 2 + 2 * num_layers)

    # Node features and symmetric weighted adjacency (graph.x, graph.adj).
    x = jax.random.normal(k_x, (batch, n_nodes, layers_dim[0]), jnp.float32)
    a = jax.random.uniform(k_adj, (batch, n_nodes, n_nodes), jnp.float32)
    a = 0.5 * (a + jnp.swapaxes(a, -1, -2))
    adj = jnp.where(a > 0.6, a, 0.0).astype(jnp.float32)
    adj = adj * (1.0 - jnp.eye(n_nodes, dtype=jnp.float32))[None]
    # Edge-dropout preamble: with p = edge_dropout_rate = 0 (eval), dropout_adj is
    # the identity, so adj_dropout == adj exactly.
    adj_dropout = jnp.where(adj != 0.0, adj, 0.0)

    # Deterministic parameter init (glorot-uniform weights, small random biases).
    weights, biases = [], []
    for i in range(num_layers):
        f_in, f_out = layers_dim[i], layers_dim[i + 1]
        limit = float(np.sqrt(6.0 / (f_in + f_out)))
        w = jax.random.uniform(k_w[2 * i], (f_out, f_in), jnp.float32, -limit, limit)
        b = 0.05 * jax.random.normal(k_w[2 * i + 1], (f_out,), jnp.float32)
        weights.append(w)
        biases.append(b)

    # Batched kernel (the high-throughput path).
    embeddings = dense_gcn_forward_batched(x, adj_dropout, weights, biases)
    embeddings = jax.block_until_ready(embeddings)

    for g in range(batch):
        ref = reference_forward(x[g], adj_dropout[g], weights, biases)
        for li, (got, want) in enumerate(zip(embeddings, ref)):
            got_g = np.asarray(got[g])
            want_g = np.asarray(want)
            assert got_g.shape == want_g.shape, (li, got_g.shape, want_g.shape)
            assert np.allclose(got_g, want_g, rtol=1e-2, atol=1e-2), (
                "mismatch", g, li, float(np.max(np.abs(got_g - want_g))))

    # Single-graph path (module-faithful forward for one graph).
    embeddings_1 = dense_gcn_forward(x[0], adj_dropout[0], weights, biases)
    embeddings_1 = jax.block_until_ready(embeddings_1)
    ref_1 = reference_forward(x[0], adj_dropout[0], weights, biases)
    for got, want in zip(embeddings_1, ref_1):
        assert got.shape == want.shape, (got.shape, want.shape)
        assert np.allclose(np.asarray(got), np.asarray(want), rtol=1e-2, atol=1e-2), (
            "mismatch-single", float(np.max(np.abs(np.asarray(got) - np.asarray(want)))))

    print("KERNEL_OK")
</pallas_src>

<mosaic_0001>
module attributes {stable_mosaic.version = 11 : i64} {
  func.func @_dense_gcn_kernel(%arg0: i32, %arg1: memref<1x32x32xbf16, #tpu.memory_space<vmem>>, %arg2: memref<1x32x128xf32, #tpu.memory_space<vmem>>, %arg3: memref<3x128x128xbf16, #tpu.memory_space<vmem>>, %arg4: memref<3x1x128xf32, #tpu.memory_space<vmem>>, %arg5: memref<1x32x384xf32, #tpu.memory_space<vmem>>) attributes {dimension_semantics = [#tpu.dimension_semantics<parallel>], iteration_bounds = array<i64: 4>, scalar_prefetch = 0 : i64, scratch_operands = 0 : i64, tpu.core_type = #tpu.core_type<tc>, window_params = [{transform_indices = @transform_0, window_bounds = array<i64: 1, 32, 32>}, {transform_indices = @transform_1, window_bounds = array<i64: 1, 32, 128>}, {pipeline_mode = #tpu.pipeline_mode<synchronous>, transform_indices = @transform_2, window_bounds = array<i64: 3, 128, 128>}, {pipeline_mode = #tpu.pipeline_mode<synchronous>, transform_indices = @transform_3, window_bounds = array<i64: 3, 1, 128>}, {transform_indices = @transform_4, window_bounds = array<i64: 1, 32, 384>}]} {
    %c0 = arith.constant 0 : index
    %c0_0 = arith.constant 0 : index
    %c0_1 = arith.constant 0 : index
    %0 = vector.load %arg1[%c0, %c0_0, %c0_1] : memref<1x32x32xbf16, #tpu.memory_space<vmem>>, vector<1x32x32xbf16>
    %1 = vector.shape_cast %0 : vector<1x32x32xbf16> to vector<32x32xbf16>
    %2 = arith.extf %1 : vector<32x32xbf16> to vector<32x32xf32>
    %cst = arith.constant dense<0.000000e+00> : vector<32xf32>
    %3 = vector.multi_reduction <add>, %2, %cst [1] : vector<32x32xf32> to vector<32xf32>
    %4 = vector.shape_cast %3 : vector<32xf32> to vector<32x1xf32>
    %cst_2 = arith.constant 1.000000e+00 : f32
    %5 = vector.broadcast %cst_2 : f32 to vector<32x1xf32>
    %6 = arith.maximumf %4, %5 : vector<32x1xf32>
    %7 = math.rsqrt %6 : vector<32x1xf32>
    %c0_3 = arith.constant 0 : index
    %c0_4 = arith.constant 0 : index
    %c0_5 = arith.constant 0 : index
    %8 = vector.load %arg2[%c0_3, %c0_4, %c0_5] : memref<1x32x128xf32, #tpu.memory_space<vmem>>, vector<1x32x128xf32>
    %9 = vector.shape_cast %8 : vector<1x32x128xf32> to vector<32x128xf32>
    %10 = arith.truncf %9 : vector<32x128xf32> to vector<32x128xbf16>
    %c0_6 = arith.constant 0 : index
    %c0_7 = arith.constant 0 : index
    %c0_8 = arith.constant 0 : index
    %11 = vector.load %arg3[%c0_6, %c0_7, %c0_8] : memref<3x128x128xbf16, #tpu.memory_space<vmem>>, vector<1x128x128xbf16>
    %12 = vector.shape_cast %11 : vector<1x128x128xbf16> to vector<128x128xbf16>
    %cst_9 = arith.constant dense<0.000000e+00> : vector<32x128xf32>
    %13 = tpu.matmul %10, %12, %cst_9 {dimension_numbers = #tpu.dot_dimension_numbers<[1], [0], [0], [1], [0, 0, 1, 1], [], []>} : vector<32x128xbf16>, vector<128x128xbf16>, vector<32x128xf32> -> vector<32x128xf32>
    %14 = vector.broadcast %7 : vector<32x1xf32> to vector<32x128xf32>
    %15 = arith.mulf %14, %13 : vector<32x128xf32>
    %16 = arith.truncf %15 : vector<32x128xf32> to vector<32x128xbf16>
    %cst_10 = arith.constant dense<0.000000e+00> : vector<32x128xf32>
    %17 = tpu.matmul %1, %16, %cst_10 {dimension_numbers = #tpu.dot_dimension_numbers<[1], [0], [0], [1], [0, 0, 1, 1], [], []>} : vector<32x32xbf16>, vector<32x128xbf16>, vector<32x128xf32> -> vector<32x128xf32>
    %18 = vector.broadcast %7 : vector<32x1xf32> to vector<32x128xf32>
    %19 = arith.mulf %18, %17 : vector<32x128xf32>
    %c0_11 = arith.constant 0 : index
    %c0_12 = arith.constant 0 : index
    %c0_13 = arith.constant 0 : index
    %20 = vector.load %arg4[%c0_11, %c0_12, %c0_13] : memref<3x1x128xf32, #tpu.memory_space<vmem>>, vector<1x1x128xf32>
    %21 = vector.shape_cast %20 : vector<1x1x128xf32> to vector<1x128xf32>
    %22 = vector.broadcast %21 : vector<1x128xf32> to vector<32x128xf32>
    %23 = arith.addf %19, %22 : vector<32x128xf32>
    %cst_14 = arith.constant 5.000000e-01 : f32
    %24 = vector.broadcast %cst_14 : f32 to vector<32x128xf32>
    %25 = arith.mulf %24, %23 : vector<32x128xf32>
    %cst_15 = arith.constant 4.471500e-02 : f32
    %26 = vector.broadcast %cst_15 : f32 to vector<32x128xf32>
    %27 = arith.mulf %26, %23 : vector<32x128xf32>
    %28 = arith.mulf %27, %23 : vector<32x128xf32>
    %29 = arith.mulf %28, %23 : vector<32x128xf32>
    %30 = arith.addf %23, %29 : vector<32x128xf32>
    %cst_16 = arith.constant 0.797884583 : f32
    %31 = vector.broadcast %cst_16 : f32 to vector<32x128xf32>
    %32 = arith.mulf %31, %30 : vector<32x128xf32>
    %33 = math.tanh %32 : vector<32x128xf32>
    %cst_17 = arith.constant 1.000000e+00 : f32
    %34 = vector.broadcast %cst_17 : f32 to vector<32x128xf32>
    %35 = arith.addf %34, %33 : vector<32x128xf32>
    %36 = arith.mulf %25, %35 : vector<32x128xf32>
    %c0_18 = arith.constant 0 : index
    %c0_19 = arith.constant 0 : index
    %c0_20 = arith.constant 0 : index
    %37 = vector.load %arg5[%c0_18, %c0_19, %c0_20] : memref<1x32x384xf32, #tpu.memory_space<vmem>>, vector<1x32x128xf32>
    %38 = vector.shape_cast %37 : vector<1x32x128xf32> to vector<32x128xf32>
    %39 = vector.shape_cast %36 : vector<32x128xf32> to vector<1x32x128xf32>
    tpu.vector_store %arg5[%c0_18, %c0_19, %c0_20], %39 {strides = array<i32>} : memref<1x32x384xf32, #tpu.memory_space<vmem>>, vector<1x32x128xf32>,
    %40 = arith.truncf %36 : vector<32x128xf32> to vector<32x128xbf16>
    %c1 = arith.constant 1 : index
    %c0_21 = arith.constant 0 : index
    %c0_22 = arith.constant 0 : index
    %41 = vector.load %arg3[%c1, %c0_21, %c0_22] : memref<3x128x128xbf16, #tpu.memory_space<vmem>>, vector<1x128x128xbf16>
    %42 = vector.shape_cast %41 : vector<1x128x128xbf16> to vector<128x128xbf16>
    %cst_23 = arith.constant dense<0.000000e+00> : vector<32x128xf32>
    %43 = tpu.matmul %40, %42, %cst_23 {dimension_numbers = #tpu.dot_dimension_numbers<[1], [0], [0], [1], [0, 0, 1, 1], [], []>} : vector<32x128xbf16>, vector<128x128xbf16>, vector<32x128xf32> -> vector<32x128xf32>
    %44 = vector.broadcast %7 : vector<32x1xf32> to vector<32x128xf32>
    %45 = arith.mulf %44, %43 : vector<32x128xf32>
    %46 = arith.truncf %45 : vector<32x128xf32> to vector<32x128xbf16>
    %cst_24 = arith.constant dense<0.000000e+00> : vector<32x128xf32>
    %47 = tpu.matmul %1, %46, %cst_24 {dimension_numbers = #tpu.dot_dimension_numbers<[1], [0], [0], [1], [0, 0, 1, 1], [], []>} : vector<32x32xbf16>, vector<32x128xbf16>, vector<32x128xf32> -> vector<32x128xf32>
    %48 = vector.broadcast %7 : vector<32x1xf32> to vector<32x128xf32>
    %49 = arith.mulf %48, %47 : vector<32x128xf32>
    %c1_25 = arith.constant 1 : index
    %c0_26 = arith.constant 0 : index
    %c0_27 = arith.constant 0 : index
    %50 = vector.load %arg4[%c1_25, %c0_26, %c0_27] : memref<3x1x128xf32, #tpu.memory_space<vmem>>, vector<1x1x128xf32>
    %51 = vector.shape_cast %50 : vector<1x1x128xf32> to vector<1x128xf32>
    %52 = vector.broadcast %51 : vector<1x128xf32> to vector<32x128xf32>
    %53 = arith.addf %49, %52 : vector<32x128xf32>
    %cst_28 = arith.constant 5.000000e-01 : f32
    %54 = vector.broadcast %cst_28 : f32 to vector<32x128xf32>
    %55 = arith.mulf %54, %53 : vector<32x128xf32>
    %cst_29 = arith.constant 4.471500e-02 : f32
    %56 = vector.broadcast %cst_29 : f32 to vector<32x128xf32>
    %57 = arith.mulf %56, %53 : vector<32x128xf32>
    %58 = arith.mulf %57, %53 : vector<32x128xf32>
    %59 = arith.mulf %58, %53 : vector<32x128xf32>
    %60 = arith.addf %53, %59 : vector<32x128xf32>
    %cst_30 = arith.constant 0.797884583 : f32
    %61 = vector.broadcast %cst_30 : f32 to vector<32x128xf32>
    %62 = arith.mulf %61, %60 : vector<32x128xf32>
    %63 = math.tanh %62 : vector<32x128xf32>
    %cst_31 = arith.constant 1.000000e+00 : f32
    %64 = vector.broadcast %cst_31 : f32 to vector<32x128xf32>
    %65 = arith.addf %64, %63 : vector<32x128xf32>
    %66 = arith.mulf %55, %65 : vector<32x128xf32>
    %c0_32 = arith.constant 0 : index
    %c0_33 = arith.constant 0 : index
    %c128 = arith.constant 128 : index
    %67 = vector.load %arg5[%c0_32, %c0_33, %c128] : memref<1x32x384xf32, #tpu.memory_space<vmem>>, vector<1x32x128xf32>
    %68 = vector.shape_cast %67 : vector<1x32x128xf32> to vector<32x128xf32>
    %69 = vector.shape_cast %66 : vector<32x128xf32> to vector<1x32x128xf32>
    tpu.vector_store %arg5[%c0_32, %c0_33, %c128], %69 {strides = array<i32>} : memref<1x32x384xf32, #tpu.memory_space<vmem>>, vector<1x32x128xf32>,
    %70 = arith.truncf %66 : vector<32x128xf32> to vector<32x128xbf16>
    %c2 = arith.constant 2 : index
    %c0_34 = arith.constant 0 : index
    %c0_35 = arith.constant 0 : index
    %71 = vector.load %arg3[%c2, %c0_34, %c0_35] : memref<3x128x128xbf16, #tpu.memory_space<vmem>>, vector<1x128x128xbf16>
    %72 = vector.shape_cast %71 : vector<1x128x128xbf16> to vector<128x128xbf16>
    %cst_36 = arith.constant dense<0.000000e+00> : vector<32x128xf32>
    %73 = tpu.matmul %70, %72, %cst_36 {dimension_numbers = #tpu.dot_dimension_numbers<[1], [0], [0], [1], [0, 0, 1, 1], [], []>} : vector<32x128xbf16>, vector<128x128xbf16>, vector<32x128xf32> -> vector<32x128xf32>
    %74 = vector.broadcast %7 : vector<32x1xf32> to vector<32x128xf32>
    %75 = arith.mulf %74, %73 : vector<32x128xf32>
    %76 = arith.truncf %75 : vector<32x128xf32> to vector<32x128xbf16>
    %cst_37 = arith.constant dense<0.000000e+00> : vector<32x128xf32>
    %77 = tpu.matmul %1, %76, %cst_37 {dimension_numbers = #tpu.dot_dimension_numbers<[1], [0], [0], [1], [0, 0, 1, 1], [], []>} : vector<32x32xbf16>, vector<32x128xbf16>, vector<32x128xf32> -> vector<32x128xf32>
    %78 = vector.broadcast %7 : vector<32x1xf32> to vector<32x128xf32>
    %79 = arith.mulf %78, %77 : vector<32x128xf32>
    %c2_38 = arith.constant 2 : index
    %c0_39 = arith.constant 0 : index
    %c0_40 = arith.constant 0 : index
    %80 = vector.load %arg4[%c2_38, %c0_39, %c0_40] : memref<3x1x128xf32, #tpu.memory_space<vmem>>, vector<1x1x128xf32>
    %81 = vector.shape_cast %80 : vector<1x1x128xf32> to vector<1x128xf32>
    %82 = vector.broadcast %81 : vector<1x128xf32> to vector<32x128xf32>
    %83 = arith.addf %79, %82 : vector<32x128xf32>
    %cst_41 = arith.constant 5.000000e-01 : f32
    %84 = vector.broadcast %cst_41 : f32 to vector<32x128xf32>
    %85 = arith.mulf %84, %83 : vector<32x128xf32>
    %cst_42 = arith.constant 4.471500e-02 : f32
    %86 = vector.broadcast %cst_42 : f32 to vector<32x128xf32>
    %87 = arith.mulf %86, %83 : vector<32x128xf32>
    %88 = arith.mulf %87, %83 : vector<32x128xf32>
    %89 = arith.mulf %88, %83 : vector<32x128xf32>
    %90 = arith.addf %83, %89 : vector<32x128xf32>
    %cst_43 = arith.constant 0.797884583 : f32
    %91 = vector.broadcast %cst_43 : f32 to vector<32x128xf32>
    %92 = arith.mulf %91, %90 : vector<32x128xf32>
    %93 = math.tanh %92 : vector<32x128xf32>
    %cst_44 = arith.constant 1.000000e+00 : f32
    %94 = vector.broadcast %cst_44 : f32 to vector<32x128xf32>
    %95 = arith.addf %94, %93 : vector<32x128xf32>
    %96 = arith.mulf %85, %95 : vector<32x128xf32>
    %c0_45 = arith.constant 0 : index
    %c0_46 = arith.constant 0 : index
    %c256 = arith.constant 256 : index
    %97 = vector.load %arg5[%c0_45, %c0_46, %c256] : memref<1x32x384xf32, #tpu.memory_space<vmem>>, vector<1x32x128xf32>
    %98 = vector.shape_cast %97 : vector<1x32x128xf32> to vector<32x128xf32>
    %99 = vector.shape_cast %96 : vector<32x128xf32> to vector<1x32x128xf32>
    tpu.vector_store %arg5[%c0_45, %c0_46, %c256], %99 {strides = array<i32>} : memref<1x32x384xf32, #tpu.memory_space<vmem>>, vector<1x32x128xf32>,
    return
  }
  func.func @transform_0(%arg0: i32) -> (i32, i32, i32) {
    %c0_i32 = arith.constant 0 : i32
    %c0_i32_0 = arith.constant 0 : i32
    %c0_i32_1 = arith.constant 0 : i32
    return %arg0, %c0_i32, %c0_i32_0 : i32, i32, i32
  }
  func.func @transform_1(%arg0: i32) -> (i32, i32, i32) {
    %c0_i32 = arith.constant 0 : i32
    %c0_i32_0 = arith.constant 0 : i32
    %c0_i32_1 = arith.constant 0 : i32
    return %arg0, %c0_i32, %c0_i32_0 : i32, i32, i32
  }
  func.func @transform_2(%arg0: i32) -> (i32, i32, i32) {
    %c0_i32 = arith.constant 0 : i32
    %c0_i32_0 = arith.constant 0 : i32
    %c0_i32_1 = arith.constant 0 : i32
    %c0_i32_2 = arith.constant 0 : i32
    return %c0_i32, %c0_i32_0, %c0_i32_1 : i32, i32, i32
  }
  func.func @transform_3(%arg0: i32) -> (i32, i32, i32) {
    %c0_i32 = arith.constant 0 : i32
    %c0_i32_0 = arith.constant 0 : i32
    %c0_i32_1 = arith.constant 0 : i32
    %c0_i32_2 = arith.constant 0 : i32
    return %c0_i32, %c0_i32_0, %c0_i32_1 : i32, i32, i32
  }
  func.func @transform_4(%arg0: i32) -> (i32, i32, i32) {
    %c0_i32 = arith.constant 0 : i32
    %c0_i32_0 = arith.constant 0 : i32
    %c0_i32_1 = arith.constant 0 : i32
    return %arg0, %c0_i32, %c0_i32_0 : i32, i32, i32
  }
}

</mosaic_0001>

<bundles_post_ra>
// kernel: tpu_custom_call.1
= control target key start
LH: loop header
LB: loop body
LE: loop exit
PB: predicated region body
PF: predicated region fallthrough
CT: control target
= control target key end

     0   :  { %s1941_s0 = inlined_call_operand.hbm [shape: bf16[4,32,32], index: 0, kind: input, shape index: {}]   ;;  %s1942_s1 = inlined_call_operand.hbm [shape: f32[4,32,128], index: 1, kind: input, shape index: {}]   ;;  %s1943_s2 = inlined_call_operand.hbm [shape: bf16[3,128,128], index: 2, kind: input, shape index: {}]   ;;  %s1944_s3 = inlined_call_operand.vmem [shape: f32[3,1,128], index: 3, kind: input, shape index: {}]   ;;  %s1945_s4 = inlined_call_operand.hbm [shape: f32[4,32,384], index: 4, kind: output, shape index: {}]  }
   0x1   :  { %1949 = sst [smem:[#allocation13_spill]] %s1941_s0 }
   0x2   :  { %1950 = sst [smem:[#allocation14_spill]] %s1943_s2 }
   0x3   :  { %9 = vsyncpa [#allocation3], 0 }
   0x4   :  { %11 = vsyncpa [#allocation3 + $0x1], 0 }
   0x5   :  { %12 = vsyncpa [#allocation6], 0 }
   0x6   :  { %14 = vsyncpa [#allocation6 + $0x1], 0 }
   0x7   :  { %15 = vsyncpa [#allocation4], 0 }
   0x8   :  { %17 = vsyncpa [#allocation4 + $0x1], 0  ;;  %s1621_s15 = smov 0   ;;  %s1623_s16 = smov 0  }
   0x9   :  { %s1625_s17 = smov 0   ;;  %s1627_s18 = smov 0  }
   0xa LB: > { %s1642_s19 = sadd.s32 4294967295, %s1584_s18   ;;  %s1118_s20 = sadd.s32 4294967294, %s1584_s18   ;;  %s1584_s18 = sphi %s1627_s18, %s1969_s18   ;;  %s1580_s17 = sphi %s1625_s17, %s1968_s17   ;;  %s1576_s16 = sphi %s1623_s16, %s1967_s16   ;;  %s1572_s15 = sphi %s1621_s15, %s1966_s15  }
   0xb   : > { %p43_p0 = scmp.ne.s32.totalorder %s1576_s16, %s1572_s15  ;;  %p1946_p1 = scmp.eq.s32.totalorder %s1642_s19, 0 }
   0xc   : > { %p141_p3 = scmp.eq.s32.totalorder %s1118_s20, 3  ;;  %p1119_p5 = scmp.ge.s32.totalorder %s1584_s18, 1 }
   0xd   : > { %p1651_p4 = por %p1946_p1, %p43_p0  ;;  %p148_p7 = scmp.lt.s32.totalorder %s1584_s18, 5 }
   0xe   : > { %p1656_p6 = por %p141_p3, %p43_p0  ;;  %s1586_s24 = smov [#allocation7]  }
   0xf   : > { %s1951_s21 = scalar_select %p1651_p4, 1, 0 }
  0x10   : > { %s1952_s22 = scalar_select %p1656_p6, 1, 0 }
  0x11   : > { %p1661_p8 = pnand %p1119_p5, %p148_p7  ;;  %s160_s25 = sshll.u32 %s1586_s24, 4  ;;  %s161_s25 = int_to_ptr.vmem [resolvable:$true] %s160_s25 }
  0x12   : > { %s1674_s27 = sadd.s32 1, %s1584_s18   ;;  %s30_s28 = sadd.s32 1, %s1580_s17 }
  0x13   : > { %p1312_p9 = pneg %p1661_p8  ;;  %s27_s29 = ssub.s32 %s1584_s18, %s1674_s27 }
  0x14   : > { %s1441_s30 = scalar_lea.vmem %s161_s25, 3072  ;;  %p1449_p3 = scmp.lt.s32.totalorder %s161_s25, %s161_s25 }
  0x15   : > { %p1669_p10 = pnand %p1312_p9, %p1946_p1  ;;  %p1442_p12 = scmp.ne.s32.totalorder %s161_s25, %s1441_s30 }
  0x16   : > { %p1450_p5 = scmp.lt.s32.totalorder %s1441_s30, %s1441_s30 }
  0x17   : > { %p1432_p11 = pneg %p1669_p10 }
  0x18   : > { %p1451_p7 = por %p1450_p5, %p1449_p3 }
  0x19   : > { %p1444_p13 = pnand %p1442_p12, %p1432_p11 }
  0x1b   : > { %p1445_p0 = pneg %p1444_p13 }
  0x1d   : > { %p1452_p2 = pnand %p1451_p7, %p1445_p0 }
  0x1f   : > { %1455 = shalt.err (!%p1452_p2)
}
  0x20   : > { %s1587_s5 = smov 64   ;;  %s1588_s6 = smov 4  }
  0x21   : > { %s1955_s2 = sld [smem:[#allocation14_spill]]  ;;  %p28_p2 = scmp.eq.s32.totalorder %s27_s29, 0 }
  0x22   : > { %p37_p9 = scmp.ne.s32.totalorder %s1580_s17, %s1576_s16  ;;  %p38_p11 = scmp.eq.s32.totalorder %s1584_s18, 0 }
  0x23   : > { %p1328_p12 = scmp.lt.s32.totalorder %s1584_s18, 4  ;;  %p1956_p0 = scmp.eq.s32.totalorder %s1642_s19, 3 }
  0x24   : > { %s1694_s9 = scalar_select %p28_p2, %s1580_s17, %s30_s28  }
  0x25   : > { %p39_p13 = por %p38_p11, %p37_p9  ;;  %p1698_p3 = por %p1956_p0, %p37_p9 }
  0x26   : > { %s1703_s11 = sand.u32 1, %s1580_s17   ;;  %s1172_s12 = sshll.u32 %s1584_s18, 8 }
  0x27   : > { %1315 = dma.hbm_to_vmem [thread:$0]  (!%p1669_p10), %s1955_s2, 3072, %s161_s25, [#allocation6], %s1587_s5, %s1587_s5, %s1588_s6  }
  0x28   : > { %s1957_s10 = scalar_select %p1698_p3, 1, 0 }
  0x29   : > { %s1122_s13 = sshll.u32 %s1703_s11, 4  ;;  %s1958_s0 = sld [smem:[#allocation13_spill]] }
  0x2a   : > { %s181_s25 = scalar_lea.vmem [#allocation2], %s1122_s13  ;;  %p1712_p10 = pnand %p1328_p12, %p39_p13 }
  0x2b   : > { %s188_s26 = sshll.u32 %s181_s25, 4  ;;  %s178_s30 = scalar_lea.sflag [#allocation3], %s1703_s11  ;;  %s1716_s26 = int_to_ptr.vmem [resolvable:$true] %s188_s26 }
  0x2c   : > { %p1458_p7 = pneg %p1712_p10 }
  0x2f   : > { %s1710_s24 = scalar_lea.hbm %s1958_s0, %s1172_s12  ;;  %s1461_s13 = scalar_lea.hbm %s1958_s0, 1024 }
  0x30   : > { %s1456_s7 = scalar_lea.hbm %s1710_s24, 256  ;;  %p1462_p11 = scmp.lt.s32.totalorder %s1710_s24, %s1958_s0 }
  0x31   : > { %p1457_p5 = scmp.ne.s32.totalorder %s1710_s24, %s1456_s7  ;;  %p1463_p12 = scmp.lt.s32.totalorder %s1461_s13, %s1456_s7 }
  0x33   : > { %p1459_p2 = pnand %p1458_p7, %p1457_p5  ;;  %p1464_p13 = por %p1463_p12, %p1462_p11 }
  0x35   : > { %p1460_p9 = pneg %p1459_p2 }
  0x37   : > { %p1465_p0 = pnand %p1464_p13, %p1460_p9 }
  0x39   : > { %1468 = shalt.err (!%p1465_p0)
}
  0x3a   : > { %s1469_s25 = scalar_lea.vmem %s1716_s26, 256  ;;  %s1589_s8 = smov [#allocation2]  }
  0x3b   : > { %p1470_p1 = scmp.ne.s32.totalorder %s1716_s26, %s1469_s25  ;;  %s1474_s12 = sshll.u32 %s1589_s8, 4  ;;  %s1475_s12 = int_to_ptr.vmem [resolvable:$false] %s1474_s12 }
  0x3c   : > { %s1476_s29 = scalar_lea.vmem %s1475_s12, 512  ;;  %p1477_p6 = scmp.lt.s32.totalorder %s1716_s26, %s1475_s12 }
  0x3d   : > { %p1472_p5 = pnand %p1470_p1, %p1458_p7  ;;  %p1478_p3 = scmp.lt.s32.totalorder %s1476_s29, %s1469_s25 }
  0x3f   : > { %p1473_p2 = pneg %p1472_p5  ;;  %p1479_p4 = por %p1478_p3, %p1477_p6 }
  0x41   : > { %p1480_p11 = pnand %p1479_p4, %p1473_p2 }
  0x43   : > { %1483 = shalt.err (!%p1480_p11)
}
  0x44   : > { %1319 = dma.hbm_to_vmem [thread:$0]  (!%p1712_p10), %s1710_s24, 256, %s1716_s26, %s178_s30, %s1587_s5, %s1587_s5, %s1588_s6  }
  0x45   : > { %s1125_s7 = sshll.u32 %s1703_s11, 5  ;;  %s1173_s13 = sshll.u32 %s1584_s18, 9 }
  0x46   : > { %s1754_s20 = scalar_lea.hbm %s1942_s1, %s1173_s13  ;;  %s202_s25 = scalar_lea.vmem [#allocation5], %s1125_s7 }
  0x47   : > { %s209_s8 = sshll.u32 %s202_s25, 4  ;;  %s1960_s12 = sand.u32 1, %s1584_s18   ;;  %s1756_s8 = int_to_ptr.vmem [resolvable:$true] %s209_s8 }
  0x48   : > { %s1760_s0 = scalar_lea.sflag [#allocation6], %s1960_s12  ;;  %s1484_s2 = scalar_lea.hbm %s1754_s20, 512 }
  0x49   : > { %p1485_p1 = scmp.ne.s32.totalorder %s1754_s20, %s1484_s2  ;;  %s1489_s11 = scalar_lea.hbm %s1942_s1, 2048 }
  0x4a   : > { %p1490_p3 = scmp.lt.s32.totalorder %s1754_s20, %s1942_s1  ;;  %p1491_p9 = scmp.lt.s32.totalorder %s1489_s11, %s1484_s2 }
  0x4b   : > { %p1487_p4 = pnand %p1485_p1, %p1458_p7 }
  0x4c   : > { %p1492_p12 = por %p1491_p9, %p1490_p3 }
  0x4d   : > { %p1488_p6 = pneg %p1487_p4 }
  0x4f   : > { %p1493_p13 = pnand %p1492_p12, %p1488_p6 }
  0x51   : > { %1496 = shalt.err (!%p1493_p13)
}
  0x52   : > { %s1497_s30 = scalar_lea.vmem %s1756_s8, 512  ;;  %s1590_s7 = smov [#allocation5]  }
  0x53   : > { %p1498_p0 = scmp.ne.s32.totalorder %s1756_s8, %s1497_s30  ;;  %s1502_s13 = sshll.u32 %s1590_s7, 4  ;;  %s1503_s13 = int_to_ptr.vmem [resolvable:$false] %s1502_s13 }
  0x54   : > { %s1504_s29 = scalar_lea.vmem %s1503_s13, 1024  ;;  %p1505_p11 = scmp.lt.s32.totalorder %s1756_s8, %s1503_s13 }
  0x55   : > { %p1500_p5 = pnand %p1498_p0, %p1458_p7  ;;  %p1506_p1 = scmp.lt.s32.totalorder %s1504_s29, %s1497_s30 }
  0x57   : > { %p1501_p2 = pneg %p1500_p5  ;;  %p1507_p4 = por %p1506_p1, %p1505_p11 }
  0x59   : > { %p1508_p3 = pnand %p1507_p4, %p1501_p2 }
  0x5b   : > { %1511 = shalt.err (!%p1508_p3)
}
  0x5c   : > { %s1591_s2 = smov 128   ;;  %s1592_s14 = smov 8  }
  0x5d   : > { %1322 = dma.hbm_to_vmem [thread:$0]  (!%p1712_p10), %s1754_s20, 512, %s1756_s8, %s1760_s0, %s1591_s2, %s1591_s2, %s1592_s14  }
  0x5e   : > { %221 = sbr.rel (%p1661_p8) target bundleno = 1479 (0x5c7), region = 36  ;;  %s1788_s25 = sand.u32 (!%p1661_p8), 1, %s1576_s16  }
  0x5f   : > { %s1129_s12 = sshll.u32 (!%p1661_p8), %s1788_s25, 4  ;;  %s224_s5 = scalar_lea.sflag (!%p1661_p8), [#allocation3], %s1788_s25 }
  0x60   : > { %s227_s6 = scalar_lea.vmem (!%p1661_p8), [#allocation2], %s1129_s12  ;;  %p1961_p7 = scmp.ne.s32.totalorder (!%p1661_p8), %s1951_s21, 0 }
  0x63   : > { %1555 = dma.done.wait (%p1961_p7), %s224_s5, 256  }
  0x64   : > { %1557 = vsyncadd (%p1961_p7), %s224_s5, 4294967040  ;;  %s232_s0 = sand.u32 1, %s1642_s19   ;;  %s1130_s23 = sshll.u32 %s1788_s25, 5 }
  0x65   : > { %s233_s28 = scalar_lea.sflag [#allocation6], %s232_s0  ;;  %s1798_s20 = scalar_lea.vmem [#allocation5], %s1130_s23 }
  0x66   : > { %1559 = dma.done.wait (%p1961_p7), %s233_s28, 512  }
  0x67   : > { %1561 = vsyncadd (%p1961_p7), %s233_s28, 4294966784  ;;  %p1962_p8 = scmp.eq.s32.totalorder %s1642_s19, 0 }
  0x69   : > { %1563 = dma.done.wait (%p1962_p8), [#allocation6], 3072   ;;  %p1963_p10 = pmov %p1962_p8 }
  0x6a   : > { %v1370_v0 = vld [vmem:[#allocation7 + $0x38] sm:$0xff]   ;;  %v1371_v1 = vld [vmem:[#allocation7 + $0x30] sm:$0xff]   ;;  %v1372_v2 = vld [vmem:[#allocation7 + $0x28] sm:$0xff]   ;;  %vm279_vm0 = vcmask 261120   ;;  %s1300_s11 = smul.u32 96, %s1788_s25  ;;  %p1964_p9 = scmp.ne.s32.totalorder %s1957_s10, 0 }
  0x6b   : > { %1565 = vsyncadd (%p1963_p10), [#allocation6], 4294964224  ;;  %1216 = vmatprep.subr.bf16.mxu0 %v1370_v0  ;;  %v1373_v3 = vld [vmem:[#allocation7 + $0x20] sm:$0xff]   ;;  %v301_v5 = vld [vmem:[%s1798_s20 + $0x8] sm:$0xff]  ;;  %s1301_s29 = smul.u32 1536, %s1642_s19  ;;  %s1000_s19 = scalar_lea.sflag [#allocation4], %s1788_s25 }
  0x6c   : > { %1217 = vmatpush3.bf16.msra.mxu0 %v1370_v0  ;;  %v300_v4 = vld [vmem:[%s1798_s20] sm:$0xff]  ;;  %v1810_v7 = vld [vmem:[%s227_s6 + $0x8] sm:$0xff]   ;;  %v1375_v18 = vld [vmem:[#allocation7 + $0x10] sm:$0xff]   ;;  %s1848_s24 = scalar_lea.vmem [#allocation8], %s1300_s11  ;;  %s1593_s0 = smov [#allocation8]  }
  0x6d   : > { %1218 = vmatprep.subr.bf16.mxu0 %v1371_v1  ;;  %v304_v6 = vpack.c.bf16 %v301_v5, %v300_v4  ;;  %v1812_v8 = vld [vmem:[%s227_s6] sm:$0xff]   ;;  %v277_v9 = vunpack.c.l.bf16 %v1810_v7  ;;  %v278_v11 = vunpack.c.h.bf16 %v1810_v7  ;;  %v1374_v13 = vld [vmem:[#allocation7 + $0x18] sm:$0xff]   ;;  %v1376_v19 = vld [vmem:[#allocation7 + $0x8] sm:$0xff]   ;;  %s1013_s2 = sshll.u32 %s1848_s24, 4  ;;  %s1896_s5 = scalar_lea.hbm %s1945_s4, %s1301_s29  ;;  %s1898_s2 = int_to_ptr.vmem [resolvable:$true] %s1013_s2 }
  0x6e   : > { %v275_v10 = vunpack.c.l.bf16 %v1812_v8  ;;  %v276_v12 = vunpack.c.h.bf16 %v1812_v8  ;;  %v1377_v20 = vld [vmem:[#allocation7] sm:$0xff]   ;;  %v302_v21 = vld [vmem:[%s1798_s20 + $0x10] sm:$0xff]  ;;  %v303_v22 = vld [vmem:[%s1798_s20 + $0x18] sm:$0xff]  ;;  %1240 = vmatprep.mubr.msk.bf16.mxu1 %vm279_vm0, %v1812_v8  ;;  %s1512_s6 = scalar_lea.vmem %s1898_s2, 1536  ;;  %s1516_s23 = sshll.u32 %s1593_s0, 4  ;;  %s1517_s23 = int_to_ptr.vmem [resolvable:$false] %s1516_s23 }
  0x6f   : > { %1232 = vmatprep.mubr.bf16.mxu0 %v304_v6  ;;  %v286_v14 = vsel %vm279_vm0, %v277_v9, 0.0  ;;  %v289_v16 = vsel %vm279_vm0, %v278_v11, 0.0  ;;  %v305_v23 = vpack.c.bf16 %v303_v22, %v302_v21  ;;  %v1380_v46 = vld [vmem:[#allocation7 + $0x78] sm:$0xff]   ;;  %v1381_v47 = vld [vmem:[#allocation7 + $0x70] sm:$0xff]   ;;  %v1382_v48 = vld [vmem:[#allocation7 + $0x68] sm:$0xff]   ;;  %p1513_p6 = scmp.ne.s32.totalorder %s1898_s2, %s1512_s6  ;;  %s1518_s28 = scalar_lea.vmem %s1517_s23, 3072 }
  0x70   : > { %1219 = vmatpush3.bf16.msra.mxu0 %v1371_v1  ;;  %v280_v15 = vsel %vm279_vm0, %v275_v10, 0.0  ;;  %287 = vadd.xlane.f32.xlu0 %v286_v14  ;;  %v283_v17 = vsel %vm279_vm0, %v276_v12, 0.0  ;;  %v1383_v49 = vld [vmem:[#allocation7 + $0x60] sm:$0xff]   ;;  %v1384_v50 = vld [vmem:[#allocation7 + $0x58] sm:$0xff]   ;;  %v1385_v51 = vld [vmem:[#allocation7 + $0x50] sm:$0xff]   ;;  %p1519_p0 = scmp.lt.s32.totalorder %s1898_s2, %s1517_s23  ;;  %p1520_p5 = scmp.lt.s32.totalorder %s1518_s28, %s1512_s6 }
  0x71   : > { %1220 = vmatprep.subr.bf16.mxu0 %v1372_v2  ;;  %281 = vadd.xlane.f32.xlu1 %v280_v15  ;;  %v1386_v52 = vld [vmem:[#allocation7 + $0x48] sm:$0xff]   ;;  %v1387_v53 = vld [vmem:[#allocation7 + $0x40] sm:$0xff]   ;;  %p1514_p12 = pnand %p1513_p6, %p1964_p9 }
  0x72   : > { %v1144_v55 = vld [vmem:[%s1944_s3] ss:$0 sm:$0xff]  ;;  %p1521_p2 = por %p1520_p5, %p1519_p0 }
  0x73   : > { %p1515_p13 = pneg %p1514_p12 }
  0x74   : > { %1221 = vmatpush3.bf16.msra.mxu0 %v1372_v2  ;;  %290 = vadd.xlane.f32.xlu0 %v289_v16 }
  0x75   : > { %1222 = vmatprep.subr.bf16.mxu0 %v1373_v3  ;;  %284 = vadd.xlane.f32.xlu1 %v283_v17  ;;  %p1522_p11 = pnand %p1521_p2, %p1515_p13 }
  0x78   : > { %1223 = vmatpush3.bf16.msra.mxu0 %v1373_v3 }
  0x79   : > { %1224 = vmatprep.subr.bf16.mxu0 %v1374_v13 }
  0x7c   : > { %1225 = vmatpush3.bf16.msra.mxu0 %v1374_v13 }
  0x7d   : > { %1226 = vmatprep.subr.bf16.mxu0 %v1375_v18 }
  0x80   : > { %1227 = vmatpush3.bf16.msra.mxu0 %v1375_v18 }
  0x81   : > { %1228 = vmatprep.subr.bf16.mxu0 %v1376_v19 }
  0x84   : > { %1229 = vmatpush3.bf16.msra.mxu0 %v1376_v19 }
  0x85   : > { %1230 = vmatprep.subr.bf16.mxu0 %v1377_v20 }
  0x88   : > { %1231 = vmatpush3.bf16.msra.mxu0 %v1377_v20 }
  0x8b   : > { %1233 = vmatmul.mubr.bf16.vlgmr.msra.gmra.mxu0 %v305_v23 }
  0xf9   : > { %v288_v24 = vpop.xlane.xlu0 %287 }
  0xfa   : > { %v282_v25 = vpop.xlane.xlu1 %281  ;;  %v294_v27 = vmax.f32 %v288_v24, 1.0 }
  0xfb   : > { %v292_v30 = vmax.f32 %v282_v25, 1.0 }
  0xfc   : > { %1398 = vrsqrt.f32 %v294_v27 }
  0xfd   : > { %v291_v26 = vpop.xlane.xlu0 %290 }
  0xfe   : > { %v285_v28 = vpop.xlane.xlu1 %284  ;;  %v295_v29 = vmax.f32 %v291_v26, 1.0 }
  0xff   : > { %v293_v31 = vmax.f32 %v285_v28, 1.0 }
 0x100   : > { %1400 = vrsqrt.f32 %v295_v29 }
 0x101   : > { %1402 = vrsqrt.f32 %v292_v30 }
 0x102   : > { %1404 = vrsqrt.f32 %v293_v31 }
 0x109   : > { %v1826_v33 = vpop.eup %1398 }
 0x10d   : > { %v1828_v34 = vpop.eup %1400 }
 0x10e   : > { %v1830_v36 = vpop.eup %1402 }
 0x10f   : > { %v1832_v37 = vpop.eup %1404 }
 0x14b   : > { %v1234_v32 = vpop.f32.mrf.mxu0 }
 0x14c   : > { %v421_v39 = vmul.f32 %v1826_v33, %v1234_v32 }
 0x14d   : > { %v404_v35 = vpop.f32.mrf.mxu0 }
 0x14e   : > { %v419_v42 = vmul.f32 %v1830_v36, %v404_v35 }
 0x14f   : > { %v1235_v38 = vpop.f32.mrf.mxu0 }
 0x150   : > { %v422_v40 = vmul.f32 %v1828_v34, %v1235_v38 }
 0x151   : > { %v407_v41 = vpop.f32.mrf.mxu0 }
 0x152   : > { %v420_v43 = vmul.f32 %v1832_v37, %v407_v41  ;;  %v424_v44 = vpack.c.bf16 %v422_v40, %v421_v39 }
 0x154   : > { %v423_v45 = vpack.c.bf16 %v420_v43, %v419_v42  ;;  %1236 = vmatprep.subr.bf16.mxu1 %v424_v44 }
 0x155   : > { %1237 = vmatpush3.bf16.msra.mxu1 %v424_v44 }
 0x156   : > { %1238 = vmatprep.subr.bf16.mxu1 %v423_v45 }
 0x159   : > { %1239 = vmatpush3.bf16.msra.mxu1 %v423_v45 }
 0x15a   : > { %1244 = vmatprep.subr.bf16.mxu1 %v1380_v46 }
 0x15c   : > { %1241 = vmatmul.mubr.msk.bf16.vlgmr.msra.gmra.mxu1 %vm279_vm0, %v1810_v7 }
 0x15d   : > { %1245 = vmatpush3.bf16.msra.mxu1 %v1380_v46 }
 0x15e   : > { %1246 = vmatprep.subr.bf16.mxu1 %v1381_v47 }
 0x161   : > { %1247 = vmatpush3.bf16.msra.mxu1 %v1381_v47 }
 0x162   : > { %1248 = vmatprep.subr.bf16.mxu1 %v1382_v48 }
 0x165   : > { %1249 = vmatpush3.bf16.msra.mxu1 %v1382_v48 }
 0x166   : > { %1250 = vmatprep.subr.bf16.mxu1 %v1383_v49 }
 0x169   : > { %1251 = vmatpush3.bf16.msra.mxu1 %v1383_v49 }
 0x16a   : > { %1252 = vmatprep.subr.bf16.mxu1 %v1384_v50 }
 0x16d   : > { %1253 = vmatpush3.bf16.msra.mxu1 %v1384_v50 }
 0x16e   : > { %1254 = vmatprep.subr.bf16.mxu1 %v1385_v51 }
 0x171   : > { %1255 = vmatpush3.bf16.msra.mxu1 %v1385_v51 }
 0x172   : > { %1256 = vmatprep.subr.bf16.mxu1 %v1386_v52 }
 0x175   : > { %1257 = vmatpush3.bf16.msra.mxu1 %v1386_v52 }
 0x176   : > { %1258 = vmatprep.subr.bf16.mxu1 %v1387_v53 }
 0x179   : > { %1259 = vmatpush3.bf16.msra.mxu1 %v1387_v53 }
 0x21c   : > { %v1242_v54 = vpop.f32.mrf.mxu1 }
 0x21d   : > { %v492_v56 = vmul.f32 %v1826_v33, %v1242_v54 }
 0x21e   : > { %v475_v57 = vpop.f32.mrf.mxu1 }
 0x21f   : > { %v503_v58 = vadd.f32 %v1144_v55, %v492_v56  ;;  %v490_v59 = vmul.f32 %v1830_v36, %v475_v57  ;;  %v1388_v57 = vld [vmem:[#allocation7 + $0xb8] sm:$0xff]  }
 0x220   : > { %v1243_v60 = vpop.f32.mrf.mxu1  ;;  %1272 = vmatprep.subr.bf16.mxu0 %v1388_v57 }
 0x221   : > { %v511_v61 = vmul.f32 0.044715, %v503_v58  ;;  %v501_v62 = vadd.f32 %v1144_v55, %v490_v59  ;;  %v493_v63 = vmul.f32 %v1828_v34, %v1243_v60  ;;  %v507_v26 = vmul.f32 0.5, %v503_v58  ;;  %1273 = vmatpush3.bf16.msra.mxu0 %v1388_v57  ;;  %v1390_v59 = vld [vmem:[#allocation7 + $0xa8] sm:$0xff]   ;;  %v1391_v60 = vld [vmem:[#allocation7 + $0xa0] sm:$0xff]  }
 0x222   : > { %v478_v0 = vpop.f32.mrf.mxu1 }
 0x223   : > { %v515_v1 = vmul.f32 %v511_v61, %v503_v58  ;;  %v509_v2 = vmul.f32 0.044715, %v501_v62  ;;  %v504_v3 = vadd.f32 %v1144_v55, %v493_v63  ;;  %v491_v4 = vmul.f32 %v1832_v37, %v478_v0  ;;  %v1392_v61 = vld [vmem:[#allocation7 + $0x98] sm:$0xff]   ;;  %v1394_v63 = vld [vmem:[#allocation7 + $0x88] sm:$0xff]  }
 0x224   : > { %v505_v31 = vmul.f32 0.5, %v501_v62 }
 0x225   : > { %v519_v5 = vmul.f32 %v515_v1, %v503_v58  ;;  %v513_v6 = vmul.f32 %v509_v2, %v501_v62  ;;  %v512_v9 = vmul.f32 0.044715, %v504_v3  ;;  %v502_v10 = vadd.f32 %v1144_v55, %v491_v4  ;;  %v1156_v1 = vld [vmem:[%s1944_s3 + $0x1] ss:$0 sm:$0xff] }
 0x226   : > { %v508_v35 = vmul.f32 0.5, %v504_v3 }
 0x227   : > { %v523_v11 = vadd.f32 %v519_v5, %v503_v58  ;;  %v516_v12 = vmul.f32 %v512_v9, %v504_v3  ;;  %v510_v13 = vmul.f32 0.044715, %v502_v10  ;;  %v517_v14 = vmul.f32 %v513_v6, %v501_v62  ;;  %v1389_v58 = vld [vmem:[#allocation7 + $0xb0] sm:$0xff]  }
 0x228   : > { %v506_v41 = vmul.f32 0.5, %v502_v10  ;;  %1274 = vmatprep.subr.bf16.mxu0 %v1389_v58 }
 0x229   : > { %v520_v15 = vmul.f32 %v516_v12, %v504_v3  ;;  %v514_v16 = vmul.f32 %v510_v13, %v502_v10  ;;  %v527_v17 = vmul.f32 0.7978846, %v523_v11  ;;  %v521_v18 = vadd.f32 %v517_v14, %v501_v62  ;;  %1275 = vmatpush3.bf16.msra.mxu0 %v1389_v58  ;;  %v1393_v62 = vld [vmem:[#allocation7 + $0x90] sm:$0xff]  }
 0x22a   : > { %1276 = vmatprep.subr.bf16.mxu0 %v1390_v59 }
 0x22b   : > { %v524_v19 = vadd.f32 %v520_v15, %v504_v3  ;;  %v518_v20 = vmul.f32 %v514_v16, %v502_v10  ;;  %1406 = vtanh.f32 %v527_v17  ;;  %v525_v21 = vmul.f32 0.7978846, %v521_v18 }
 0x22d   : > { %v522_v22 = vadd.f32 %v518_v20, %v502_v10  ;;  %v528_v23 = vmul.f32 0.7978846, %v524_v19  ;;  %1408 = vtanh.f32 %v525_v21  ;;  %1277 = vmatpush3.bf16.msra.mxu0 %v1390_v59 }
 0x22e   : > { %1278 = vmatprep.subr.bf16.mxu0 %v1391_v60 }
 0x22f   : > { %v526_v24 = vmul.f32 0.7978846, %v522_v22  ;;  %1410 = vtanh.f32 %v528_v23 }
 0x231   : > { %1412 = vtanh.f32 %v526_v24  ;;  %1279 = vmatpush3.bf16.msra.mxu0 %v1391_v60 }
 0x232   : > { %1280 = vmatprep.subr.bf16.mxu0 %v1392_v61 }
 0x235   : > { %1281 = vmatpush3.bf16.msra.mxu0 %v1392_v61 }
 0x236   : > { %1282 = vmatprep.subr.bf16.mxu0 %v1393_v62 }
 0x238   : > { %v1407_v25 = vpop.eup %1406 }
 0x239   : > { %v535_v27 = vadd.f32 1.0, %v1407_v25  ;;  %1283 = vmatpush3.bf16.msra.mxu0 %v1393_v62 }
 0x23a   : > { %v1409_v28 = vpop.eup %1408  ;;  %1284 = vmatprep.subr.bf16.mxu0 %v1394_v63 }
 0x23b   : > { %v539_v29 = vmul.f32 %v535_v27, %v507_v26  ;;  %v533_v32 = vadd.f32 1.0, %v1409_v28 }
 0x23c   : > { %v1411_v30 = vpop.eup %1410 }
 0x23d   : > { %v536_v38 = vadd.f32 1.0, %v1411_v30  ;;  %543 = vst [vmem:[%s1848_s24 + $0x30] sm:$0xff] %v539_v29  ;;  %v537_v40 = vmul.f32 %v533_v32, %v505_v31  ;;  %1285 = vmatpush3.bf16.msra.mxu0 %v1394_v63 }
 0x23e   : > { %v1413_v39 = vpop.eup %1412 }
 0x23f   : > { %v534_v42 = vadd.f32 1.0, %v1413_v39  ;;  %v540_v43 = vmul.f32 %v536_v38, %v508_v35  ;;  %541 = vst [vmem:[%s1848_s24] sm:$0xff] %v537_v40 }
 0x241   : > { %v538_v44 = vmul.f32 %v534_v42, %v506_v41  ;;  %544 = vst [vmem:[%s1848_s24 + $0x48] sm:$0xff] %v540_v43  ;;  %v546_v46 = vpack.c.bf16 %v540_v43, %v539_v29 }
 0x243   : > { %542 = vst [vmem:[%s1848_s24 + $0x18] sm:$0xff] %v538_v44  ;;  %v545_v45 = vpack.c.bf16 %v538_v44, %v537_v40 }
 0x245   : > { %1260 = vmatprep.mubr.bf16.mxu1 %v545_v45 }
 0x246   : > { %1261 = vmatmul.mubr.bf16.vlgmr.msra.gmra.mxu1 %v546_v46 }
 0x247   : > { %1268 = vmatprep.mubr.msk.bf16.mxu1 %vm279_vm0, %v1812_v8 }
 0x306   : > { %v1262_v47 = vpop.f32.mrf.mxu1 }
 0x307   : > { %v663_v50 = vmul.f32 %v1826_v33, %v1262_v47 }
 0x308   : > { %v646_v48 = vpop.f32.mrf.mxu1 }
 0x309   : > { %v661_v53 = vmul.f32 %v1830_v36, %v646_v48 }
 0x30a   : > { %v1263_v49 = vpop.f32.mrf.mxu1 }
 0x30b   : > { %v664_v51 = vmul.f32 %v1828_v34, %v1263_v49 }
 0x30c   : > { %v649_v52 = vpop.f32.mrf.mxu1 }
 0x30d   : > { %v666_v54 = vpack.c.bf16 %v664_v51, %v663_v50  ;;  %v662_v55 = vmul.f32 %v1832_v37, %v649_v52 }
 0x30f   : > { %v665_v56 = vpack.c.bf16 %v662_v55, %v661_v53  ;;  %1264 = vmatprep.subr.bf16.mxu1 %v666_v54 }
 0x310   : > { %1265 = vmatpush3.bf16.msra.mxu1 %v666_v54 }
 0x311   : > { %1266 = vmatprep.subr.bf16.mxu1 %v665_v56 }
 0x314   : > { %1267 = vmatpush3.bf16.msra.mxu1 %v665_v56 }
 0x317   : > { %1269 = vmatmul.mubr.msk.bf16.vlgmr.msra.gmra.mxu1 %vm279_vm0, %v1810_v7 }
 0x318   : > { %1296 = vmatprep.mubr.msk.bf16.mxu1 %vm279_vm0, %v1812_v8  ;;  %v1395_v8 = vld [vmem:[#allocation7 + $0x80] sm:$0xff]  }
 0x319   : > { %1286 = vmatprep.subr.bf16.mxu0 %v1395_v8 }
 0x31a   : > { %1287 = vmatpush3.bf16.msra.mxu0 %v1395_v8 }
 0x3d7   : > { %v1270_v0 = vpop.f32.mrf.mxu1 }
 0x3d8   : > { %v718_v2 = vmul.f32 %v1826_v33, %v1270_v0 }
 0x3d9   : > { %v701_v3 = vpop.f32.mrf.mxu1 }
 0x3da   : > { %v730_v4 = vadd.f32 %v1156_v1, %v718_v2  ;;  %v716_v5 = vmul.f32 %v1830_v36, %v701_v3  ;;  %v1168_v3 = vld [vmem:[%s1944_s3 + $0x2] ss:$0 sm:$0xff] }
 0x3db   : > { %v1271_v6 = vpop.f32.mrf.mxu1 }
 0x3dc   : > { %v738_v9 = vmul.f32 0.044715, %v730_v4  ;;  %v728_v10 = vadd.f32 %v1156_v1, %v716_v5  ;;  %v719_v11 = vmul.f32 %v1828_v34, %v1271_v6  ;;  %v734_v40 = vmul.f32 0.5, %v730_v4 }
 0x3dd   : > { %v704_v12 = vpop.f32.mrf.mxu1 }
 0x3de   : > { %v742_v13 = vmul.f32 %v738_v9, %v730_v4  ;;  %v736_v14 = vmul.f32 0.044715, %v728_v10  ;;  %v731_v15 = vadd.f32 %v1156_v1, %v719_v11  ;;  %v717_v16 = vmul.f32 %v1832_v37, %v704_v12 }
 0x3df   : > { %v732_v45 = vmul.f32 0.5, %v728_v10 }
 0x3e0   : > { %v746_v17 = vmul.f32 %v742_v13, %v730_v4  ;;  %v740_v18 = vmul.f32 %v736_v14, %v728_v10  ;;  %v739_v19 = vmul.f32 0.044715, %v731_v15  ;;  %v729_v20 = vadd.f32 %v1156_v1, %v717_v16 }
 0x3e1   : > { %v735_v47 = vmul.f32 0.5, %v731_v15 }
 0x3e2   : > { %v750_v21 = vadd.f32 %v746_v17, %v730_v4  ;;  %v743_v22 = vmul.f32 %v739_v19, %v731_v15  ;;  %v737_v23 = vmul.f32 0.044715, %v729_v20  ;;  %v744_v24 = vmul.f32 %v740_v18, %v728_v10 }
 0x3e3   : > { %v733_v51 = vmul.f32 0.5, %v729_v20 }
 0x3e4   : > { %v747_v25 = vmul.f32 %v743_v22, %v731_v15  ;;  %v741_v26 = vmul.f32 %v737_v23, %v729_v20  ;;  %v754_v27 = vmul.f32 0.7978846, %v750_v21  ;;  %v748_v28 = vadd.f32 %v744_v24, %v728_v10 }
 0x3e6   : > { %v751_v29 = vadd.f32 %v747_v25, %v731_v15  ;;  %v745_v30 = vmul.f32 %v741_v26, %v729_v20  ;;  %1414 = vtanh.f32 %v754_v27  ;;  %v752_v31 = vmul.f32 0.7978846, %v748_v28 }
 0x3e8   : > { %v749_v32 = vadd.f32 %v745_v30, %v729_v20  ;;  %v755_v35 = vmul.f32 0.7978846, %v751_v29  ;;  %1416 = vtanh.f32 %v752_v31 }
 0x3ea   : > { %v753_v38 = vmul.f32 0.7978846, %v749_v32  ;;  %1418 = vtanh.f32 %v755_v35 }
 0x3ec   : > { %1420 = vtanh.f32 %v753_v38 }
 0x3f3   : > { %v1415_v39 = vpop.eup %1414 }
 0x3f4   : > { %v762_v41 = vadd.f32 1.0, %v1415_v39 }
 0x3f5   : > { %v1417_v42 = vpop.eup %1416 }
 0x3f6   : > { %v766_v43 = vmul.f32 %v762_v41, %v734_v40  ;;  %v760_v46 = vadd.f32 1.0, %v1417_v42 }
 0x3f7   : > { %v1419_v44 = vpop.eup %1418 }
 0x3f8   : > { %v763_v48 = vadd.f32 1.0, %v1419_v44  ;;  %770 = vst [vmem:[%s1848_s24 + $0x38] sm:$0xff] %v766_v43  ;;  %v764_v50 = vmul.f32 %v760_v46, %v732_v45 }
 0x3f9   : > { %v1421_v49 = vpop.eup %1420 }
 0x3fa   : > { %v761_v52 = vadd.f32 1.0, %v1421_v49  ;;  %v767_v53 = vmul.f32 %v763_v48, %v735_v47  ;;  %768 = vst [vmem:[%s1848_s24 + $0x8] sm:$0xff] %v764_v50 }
 0x3fc   : > { %v765_v54 = vmul.f32 %v761_v52, %v733_v51  ;;  %771 = vst [vmem:[%s1848_s24 + $0x50] sm:$0xff] %v767_v53  ;;  %v773_v56 = vpack.c.bf16 %v767_v53, %v766_v43 }
 0x3fe   : > { %769 = vst [vmem:[%s1848_s24 + $0x20] sm:$0xff] %v765_v54  ;;  %v772_v55 = vpack.c.bf16 %v765_v54, %v764_v50 }
 0x400   : > { %1288 = vmatprep.mubr.bf16.mxu0 %v772_v55 }
 0x401   : > { %1289 = vmatmul.mubr.bf16.vlgmr.msra.gmra.mxu0 %v773_v56 }
 0x4c1   : > { %v1290_v57 = vpop.f32.mrf.mxu0 }
 0x4c2   : > { %v890_v60 = vmul.f32 %v1826_v33, %v1290_v57 }
 0x4c3   : > { %v873_v58 = vpop.f32.mrf.mxu0 }
 0x4c4   : > { %v888_v63 = vmul.f32 %v1830_v36, %v873_v58 }
 0x4c5   : > { %v1291_v59 = vpop.f32.mrf.mxu0 }
 0x4c6   : > { %v891_v61 = vmul.f32 %v1828_v34, %v1291_v59 }
 0x4c7   : > { %v876_v62 = vpop.f32.mrf.mxu0 }
 0x4c8   : > { %v893_v8 = vpack.c.bf16 %v891_v61, %v890_v60  ;;  %v889_v0 = vmul.f32 %v1832_v37, %v876_v62 }
 0x4ca   : > { %v892_v1 = vpack.c.bf16 %v889_v0, %v888_v63  ;;  %1292 = vmatprep.subr.bf16.mxu1 %v893_v8 }
 0x4cb   : > { %1293 = vmatpush3.bf16.msra.mxu1 %v893_v8 }
 0x4cc   : > { %1294 = vmatprep.subr.bf16.mxu1 %v892_v1 }
 0x4cf   : > { %1295 = vmatpush3.bf16.msra.mxu1 %v892_v1 }
 0x4d2   : > { %1297 = vmatmul.mubr.msk.bf16.vlgmr.msra.gmra.mxu1 %vm279_vm0, %v1810_v7 }
 0x592   : > { %v1298_v2 = vpop.f32.mrf.mxu1 }
 0x593   : > { %v945_v4 = vmul.f32 %v1826_v33, %v1298_v2 }
 0x594   : > { %v928_v5 = vpop.f32.mrf.mxu1 }
 0x595   : > { %v957_v6 = vadd.f32 %v1168_v3, %v945_v4  ;;  %v943_v9 = vmul.f32 %v1830_v36, %v928_v5 }
 0x596   : > { %v1299_v10 = vpop.f32.mrf.mxu1 }
 0x597   : > { %v965_v11 = vmul.f32 0.044715, %v957_v6  ;;  %v955_v12 = vadd.f32 %v1168_v3, %v943_v9  ;;  %v946_v13 = vmul.f32 %v1828_v34, %v1299_v10  ;;  %v961_v35 = vmul.f32 0.5, %v957_v6 }
 0x598   : > { %v931_v14 = vpop.f32.mrf.mxu1 }
 0x599   : > { %v969_v15 = vmul.f32 %v965_v11, %v957_v6  ;;  %v963_v16 = vmul.f32 0.044715, %v955_v12  ;;  %v958_v7 = vadd.f32 %v1168_v3, %v946_v13  ;;  %v944_v17 = vmul.f32 %v1832_v37, %v931_v14 }
 0x59a   : > { %v959_v41 = vmul.f32 0.5, %v955_v12 }
 0x59b   : > { %v973_v18 = vmul.f32 %v969_v15, %v957_v6  ;;  %v967_v19 = vmul.f32 %v963_v16, %v955_v12  ;;  %v966_v20 = vmul.f32 0.044715, %v958_v7  ;;  %v956_v21 = vadd.f32 %v1168_v3, %v944_v17 }
 0x59c   : > { %v962_v45 = vmul.f32 0.5, %v958_v7 }
 0x59d   : > { %v977_v33 = vadd.f32 %v973_v18, %v957_v6  ;;  %v971_v22 = vmul.f32 %v967_v19, %v955_v12  ;;  %v970_v23 = vmul.f32 %v966_v20, %v958_v7  ;;  %v964_v24 = vmul.f32 0.044715, %v956_v21 }
 0x59e   : > { %v960_v49 = vmul.f32 0.5, %v956_v21 }
 0x59f   : > { %v981_v36 = vmul.f32 0.7978846, %v977_v33  ;;  %v975_v25 = vadd.f32 %v971_v22, %v955_v12  ;;  %v974_v26 = vmul.f32 %v970_v23, %v958_v7  ;;  %v968_v27 = vmul.f32 %v964_v24, %v956_v21 }
 0x5a1   : > { %1422 = vtanh.f32 %v981_v36  ;;  %v979_v34 = vmul.f32 0.7978846, %v975_v25  ;;  %v978_v28 = vadd.f32 %v974_v26, %v958_v7  ;;  %v972_v29 = vmul.f32 %v968_v27, %v956_v21 }
 0x5a3   : > { %1424 = vtanh.f32 %v979_v34  ;;  %v982_v30 = vmul.f32 0.7978846, %v978_v28  ;;  %v976_v37 = vadd.f32 %v972_v29, %v956_v21 }
 0x5a5   : > { %1426 = vtanh.f32 %v982_v30  ;;  %v980_v31 = vmul.f32 0.7978846, %v976_v37 }
 0x5a7   : > { %1428 = vtanh.f32 %v980_v31 }
 0x5ae   : > { %v1423_v32 = vpop.eup %1422 }
 0x5af   : > { %v989_v38 = vadd.f32 1.0, %v1423_v32 }
 0x5b0   : > { %v1425_v39 = vpop.eup %1424 }
 0x5b1   : > { %v993_v40 = vmul.f32 %v989_v38, %v961_v35  ;;  %v987_v42 = vadd.f32 1.0, %v1425_v39 }
 0x5b2   : > { %v1427_v43 = vpop.eup %1426 }
 0x5b3   : > { %997 = vst [vmem:[%s1848_s24 + $0x40] sm:$0xff] %v993_v40  ;;  %v991_v44 = vmul.f32 %v987_v42, %v959_v41  ;;  %v990_v46 = vadd.f32 1.0, %v1427_v43 }
 0x5b4   : > { %v1429_v47 = vpop.eup %1428 }
 0x5b5   : > { %995 = vst [vmem:[%s1848_s24 + $0x10] sm:$0xff] %v991_v44  ;;  %v994_v48 = vmul.f32 %v990_v46, %v962_v45  ;;  %v988_v50 = vadd.f32 1.0, %v1429_v47 }
 0x5b7   : > { %998 = vst [vmem:[%s1848_s24 + $0x58] sm:$0xff] %v994_v48  ;;  %v992_v51 = vmul.f32 %v988_v50, %v960_v49 }
 0x5b9   : > { %996 = vst [vmem:[%s1848_s24 + $0x28] sm:$0xff] %v992_v51 }
 0x5ba   : > { %1525 = shalt.err (!%p1522_p11)
}
 0x5bb   : > { %s1526_s20 = scalar_lea.hbm %s1896_s5, 1536  ;;  %s1530_s11 = scalar_lea.hbm %s1945_s4, 6144 }
 0x5bc   : > { %p1527_p1 = scmp.ne.s32.totalorder %s1896_s5, %s1526_s20  ;;  %p1531_p7 = scmp.lt.s32.totalorder %s1896_s5, %s1945_s4 }
 0x5bd   : > { %p1532_p8 = scmp.lt.s32.totalorder %s1530_s11, %s1526_s20 }
 0x5be   : > { %p1528_p4 = pnand %p1527_p1, %p1964_p9 }
 0x5bf   : > { %p1533_p10 = por %p1532_p8, %p1531_p7 }
 0x5c0   : > { %p1529_p3 = pneg %p1528_p4 }
 0x5c2   : > { %p1534_p6 = pnand %p1533_p10, %p1529_p3 }
 0x5c4   : > { %1537 = shalt.err (!%p1534_p6)
}
 0x5c5   : > { %s1594_s30 = smov 384   ;;  %s1595_s7 = smov 24  }
 0x5c6   : > { %1310 = dma.vmem_to_hbm [thread:$0]  (%p1964_p9), %s1898_s2, 1536, %s1896_s5, %s1000_s19, %s1594_s30, %s1594_s30, %s1595_s7  }
 0x5c7 PF: > { %p1330_p12 = scmp.ge.s32.totalorder %s1584_s18, 2  ;;  %s1028_s13 = sand.u32 1, %s1572_s15  }
 0x5c8   : > { %p1965_p13 = scmp.ne.s32.totalorder %s1952_s22, 0  ;;  %s1029_s29 = scalar_lea.sflag [#allocation4], %s1028_s13 }
 0x5ca   : > { %p1324_p0 = pnand %p1330_p12, %p1965_p13 }
 0x5cc   : > { %p1325_p5 = pneg %p1324_p0 }
 0x5ce   : > { %1567 = dma.done.wait (%p1325_p5), %s1029_s29, 1536  }
 0x5cf   : > { %1569 = vsyncadd (%p1325_p5), %s1029_s29, 4294965760  ;;  %p20_p2 = scmp.ge.s32.totalorder %s1674_s27, 6   ;;  %s1966_s15 = smov %s1576_s16 }
 0x5d0   : > { %s1967_s16 = smov %s1580_s17  ;;  %s1968_s17 = smov %s1694_s9 }
 0x5d1   : > { %s1969_s18 = smov %s1674_s27  ;;  %22 = sbr.rel (!%p20_p2) target bundleno = 10 (0xa), region = 102 }
 0x5d6   :  { %1034 = vsyncpa [#allocation3], 1 }
 0x5d7   :  { %1036 = vsyncpa [#allocation3 + $0x1], 1 }
 0x5d8   :  { %1037 = vsyncpa [#allocation6], 1 }
 0x5d9   :  { %1039 = vsyncpa [#allocation6 + $0x1], 1 }
 0x5da   :  { %1040 = vsyncpa [#allocation4], 1 }
 0x5db   :  { %1042 = vsyncpa [#allocation4 + $0x1], 1 }

</bundles_post_ra>
